<compile_context>
chip_gen: v6e
topology: v6e:2x2x1
jax: 0.10.0
libtpu: 0.0.40
codegen_flags: <defaults>
</compile_context>

<pallas_src>
import functools

import jax
import jax.numpy as jnp
from jax.experimental import pallas as pl
from jax.experimental.pallas import tpu as pltpu

LRELU_SLOPE = 0.01  # PyTorch nn.LeakyReLU default negative_slope
BN_EPS = 1e-5       # PyTorch nn.BatchNorm1d default eps
NUM_BLOCKS = 8
BIAS_PACK_LANES = 128  # pad packed bias rows to a full lane width


def _mlp_kernel(d_outs, out_dim, x_ref, *refs):
    """refs = [w'_0 .. w'_7, w_last, bias_pack, out]."""
    out_ref = refs[-1]
    w_refs = refs[:NUM_BLOCKS]
    w_last_ref = refs[NUM_BLOCKS]
    bias_ref = refs[NUM_BLOCKS + 1]     # [NUM_BLOCKS+1, BIAS_PACK_LANES]

    h = x_ref[...].astype(jnp.float32)
    for i in range(NUM_BLOCKS):
        d = d_outs[i]
        # Linear with BN scale + bias + BN shift pre-folded into (W', b').
        b = bias_ref[i:i + 1, :d]                       # static slice: [1, d]
        h = jnp.dot(h, w_refs[i][...], preferred_element_type=jnp.float32) + b
        # LeakyReLU (slope < 1  =>  max(h, slope*h) is exact).
        h = jnp.maximum(h, LRELU_SLOPE * h)
        # Dropout(p=0) == identity.

    # last_layer: plain Linear.
    out = jnp.dot(h, w_last_ref[...], preferred_element_type=jnp.float32)
    out = out + bias_ref[NUM_BLOCKS:NUM_BLOCKS + 1, :out_dim]
    out_ref[...] = out.astype(out_ref.dtype)


def mlp_4_normalized_large(x, params):
    """params: dict with lists ws, bs, scales, shifts (len 8) and w_last, b_last."""
    batch = x.shape[0]
    out_dim = params["w_last"].shape[1]

    # --- Host-side folding: W' = W * scale, b' = b * scale + shift -----------
    ws_folded = []
    d_outs = []
    bias_rows = []
    for i in range(NUM_BLOCKS):
        w = params["ws"][i]            # [d_in, d_out]
        scale = params["scales"][i]    # [1, d_out]
        shift = params["shifts"][i]    # [1, d_out]
        b = params["bs"][i]            # [1, d_out]
        d_out = w.shape[1]
        ws_folded.append(w * scale)                       # fold BN scale into W
        bias_rows.append(b * scale + shift)               # folded bias row
        d_outs.append(d_out)
    bias_rows.append(params["b_last"])                    # last-layer bias

    # --- Pack all bias rows into a single [NUM_BLOCKS+1, 128] slab -----------
    pack_w = BIAS_PACK_LANES
    assert max(d_outs + [out_dim]) <= pack_w, "bias pack lane width too small"
    bias_pack = jnp.zeros((NUM_BLOCKS + 1, pack_w), jnp.float32)
    for i, row in enumerate(bias_rows):
        bias_pack = bias_pack.at[i, :row.shape[1]].set(row[0])

    flat_inputs = [x] + ws_folded + [params["w_last"], bias_pack]

    kernel = functools.partial(_mlp_kernel, tuple(d_outs), out_dim)
    vmem_spec = pl.BlockSpec(memory_space=pltpu.MemorySpace.VMEM)
    return pl.pallas_call(
        kernel,
        out_shape=jax.ShapeDtypeStruct((batch, out_dim), jnp.float32),
        in_specs=[vmem_spec] * len(flat_inputs),
        out_specs=vmem_spec,
    )(*flat_inputs)


def init_params(key, input_size, output_size):
    """Deterministic synthetic parameters (same shapes as the PyTorch module)."""
    dims = [input_size,
            input_size // 2, input_size // 2,
            input_size // 4, input_size // 4,
            input_size // 8, input_size // 8,
            input_size // 16, input_size // 16]
    ws, bs, scales, shifts = [], [], [], []
    for i in range(NUM_BLOCKS):
        d_in, d_out = dims[i], dims[i + 1]
        key, k_w, k_b, k_g, k_bt, k_m, k_v = jax.random.split(key, 7)
        # nn.Linear(d_in, d_out): weight [d_out, d_in] -> store transposed [d_in, d_out]
        w = jax.random.normal(k_w, (d_in, d_out), jnp.float32) * (1.0 / jnp.sqrt(d_in))
        b = jax.random.normal(k_b, (1, d_out), jnp.float32) * 0.1
        # BatchNorm1d(d_out) params + running stats (inference mode), folded
        gamma = 1.0 + 0.1 * jax.random.normal(k_g, (1, d_out), jnp.float32)
        beta = 0.1 * jax.random.normal(k_bt, (1, d_out), jnp.float32)
        running_mean = 0.1 * jax.random.normal(k_m, (1, d_out), jnp.float32)
        running_var = jnp.abs(1.0 + 0.1 * jax.random.normal(k_v, (1, d_out), jnp.float32))
        scale = gamma / jnp.sqrt(running_var + BN_EPS)
        shift = beta - running_mean * scale
        ws.append(w); bs.append(b); scales.append(scale); shifts.append(shift)

    key, k_wl, k_bl = jax.random.split(key, 3)
    d_in = dims[-1]
    w_last = jax.random.normal(k_wl, (d_in, output_size), jnp.float32) * (1.0 / jnp.sqrt(d_in))
    b_last = jax.random.normal(k_bl, (1, output_size), jnp.float32) * 0.1
    return {"ws": ws, "bs": bs, "scales": scales, "shifts": shifts,
            "w_last": w_last, "b_last": b_last}


def reference_forward(x, params):
    """Pure-JAX reference mirroring the PyTorch forward (eval mode, unfolded)."""
    h = x
    for i in range(NUM_BLOCKS):
        h = h @ params["ws"][i] + params["bs"][i]
        h = h * params["scales"][i] + params["shifts"][i]
        h = jnp.where(h > 0, h, LRELU_SLOPE * h)
    return h @ params["w_last"] + params["b_last"]


if __name__ == "__main__":
    key = jax.random.PRNGKey(0)
    key, k_x, k_p = jax.random.split(key, 3)

    batch = 8
    input_size = 128   # divisible by 16 -> feature widths 128,64,64,32,32,16,16,8,8
    output_size = 8

    x = jax.random.normal(k_x, (batch, input_size), jnp.float32)
    params = init_params(k_p, input_size, output_size)

    out = mlp_4_normalized_large(x, params)
    out = jax.block_until_ready(out)

    ref = reference_forward(x, params)
    assert out.shape == (batch, output_size)
    assert jnp.allclose(out, ref, atol=1e-4, rtol=1e-4), "mismatch vs reference"

    print("KERNEL_OK")
</pallas_src>

<mosaic_0001>
module attributes {stable_mosaic.version = 11 : i64} {
  func.func @_mlp_kernel(%arg0: memref<8x128xf32, #tpu.memory_space<vmem>>, %arg1: memref<128x64xf32, #tpu.memory_space<vmem>>, %arg2: memref<64x64xf32, #tpu.memory_space<vmem>>, %arg3: memref<64x32xf32, #tpu.memory_space<vmem>>, %arg4: memref<32x32xf32, #tpu.memory_space<vmem>>, %arg5: memref<32x16xf32, #tpu.memory_space<vmem>>, %arg6: memref<16x16xf32, #tpu.memory_space<vmem>>, %arg7: memref<16x8xf32, #tpu.memory_space<vmem>>, %arg8: memref<8x8xf32, #tpu.memory_space<vmem>>, %arg9: memref<8x8xf32, #tpu.memory_space<vmem>>, %arg10: memref<9x128xf32, #tpu.memory_space<vmem>>, %arg11: memref<8x8xf32, #tpu.memory_space<vmem>>) attributes {dimension_semantics = [], scalar_prefetch = 0 : i64, scratch_operands = 0 : i64, tpu.core_type = #tpu.core_type<tc>} {
    %c0 = arith.constant 0 : index
    %c0_0 = arith.constant 0 : index
    %0 = vector.load %arg0[%c0, %c0_0] : memref<8x128xf32, #tpu.memory_space<vmem>>, vector<8x128xf32>
    %c0_1 = arith.constant 0 : index
    %c0_2 = arith.constant 0 : index
    %1 = vector.load %arg10[%c0_1, %c0_2] : memref<9x128xf32, #tpu.memory_space<vmem>>, vector<1x64xf32>
    %c0_3 = arith.constant 0 : index
    %c0_4 = arith.constant 0 : index
    %2 = vector.load %arg1[%c0_3, %c0_4] : memref<128x64xf32, #tpu.memory_space<vmem>>, vector<128x64xf32>
    %cst = arith.constant dense<0.000000e+00> : vector<8x64xf32>
    %3 = tpu.matmul %0, %2, %cst {dimension_numbers = #tpu.dot_dimension_numbers<[1], [0], [0], [1], [0, 0, 1, 1], [], []>} : vector<8x128xf32>, vector<128x64xf32>, vector<8x64xf32> -> vector<8x64xf32>
    %4 = vector.broadcast %1 : vector<1x64xf32> to vector<8x64xf32>
    %5 = arith.addf %3, %4 : vector<8x64xf32>
    %cst_5 = arith.constant 0.00999999977 : f32
    %6 = vector.broadcast %cst_5 : f32 to vector<8x64xf32>
    %7 = arith.mulf %6, %5 : vector<8x64xf32>
    %8 = arith.maximumf %5, %7 : vector<8x64xf32>
    %c1 = arith.constant 1 : index
    %c0_6 = arith.constant 0 : index
    %9 = vector.load %arg10[%c1, %c0_6] : memref<9x128xf32, #tpu.memory_space<vmem>>, vector<1x64xf32>
    %c0_7 = arith.constant 0 : index
    %c0_8 = arith.constant 0 : index
    %10 = vector.load %arg2[%c0_7, %c0_8] : memref<64x64xf32, #tpu.memory_space<vmem>>, vector<64x64xf32>
    %cst_9 = arith.constant dense<0.000000e+00> : vector<8x64xf32>
    %11 = tpu.matmul %8, %10, %cst_9 {dimension_numbers = #tpu.dot_dimension_numbers<[1], [0], [0], [1], [0, 0, 1, 1], [], []>} : vector<8x64xf32>, vector<64x64xf32>, vector<8x64xf32> -> vector<8x64xf32>
    %12 = vector.broadcast %9 : vector<1x64xf32> to vector<8x64xf32>
    %13 = arith.addf %11, %12 : vector<8x64xf32>
    %cst_10 = arith.constant 0.00999999977 : f32
    %14 = vector.broadcast %cst_10 : f32 to vector<8x64xf32>
    %15 = arith.mulf %14, %13 : vector<8x64xf32>
    %16 = arith.maximumf %13, %15 : vector<8x64xf32>
    %c2 = arith.constant 2 : index
    %c0_11 = arith.constant 0 : index
    %17 = vector.load %arg10[%c2, %c0_11] : memref<9x128xf32, #tpu.memory_space<vmem>>, vector<1x32xf32>
    %c0_12 = arith.constant 0 : index
    %c0_13 = arith.constant 0 : index
    %18 = vector.load %arg3[%c0_12, %c0_13] : memref<64x32xf32, #tpu.memory_space<vmem>>, vector<64x32xf32>
    %cst_14 = arith.constant dense<0.000000e+00> : vector<8x32xf32>
    %19 = tpu.matmul %16, %18, %cst_14 {dimension_numbers = #tpu.dot_dimension_numbers<[1], [0], [0], [1], [0, 0, 1, 1], [], []>} : vector<8x64xf32>, vector<64x32xf32>, vector<8x32xf32> -> vector<8x32xf32>
    %20 = vector.broadcast %17 : vector<1x32xf32> to vector<8x32xf32>
    %21 = arith.addf %19, %20 : vector<8x32xf32>
    %cst_15 = arith.constant 0.00999999977 : f32
    %22 = vector.broadcast %cst_15 : f32 to vector<8x32xf32>
    %23 = arith.mulf %22, %21 : vector<8x32xf32>
    %24 = arith.maximumf %21, %23 : vector<8x32xf32>
    %c3 = arith.constant 3 : index
    %c0_16 = arith.constant 0 : index
    %25 = vector.load %arg10[%c3, %c0_16] : memref<9x128xf32, #tpu.memory_space<vmem>>, vector<1x32xf32>
    %c0_17 = arith.constant 0 : index
    %c0_18 = arith.constant 0 : index
    %26 = vector.load %arg4[%c0_17, %c0_18] : memref<32x32xf32, #tpu.memory_space<vmem>>, vector<32x32xf32>
    %cst_19 = arith.constant dense<0.000000e+00> : vector<8x32xf32>
    %27 = tpu.matmul %24, %26, %cst_19 {dimension_numbers = #tpu.dot_dimension_numbers<[1], [0], [0], [1], [0, 0, 1, 1], [], []>} : vector<8x32xf32>, vector<32x32xf32>, vector<8x32xf32> -> vector<8x32xf32>
    %28 = vector.broadcast %25 : vector<1x32xf32> to vector<8x32xf32>
    %29 = arith.addf %27, %28 : vector<8x32xf32>
    %cst_20 = arith.constant 0.00999999977 : f32
    %30 = vector.broadcast %cst_20 : f32 to vector<8x32xf32>
    %31 = arith.mulf %30, %29 : vector<8x32xf32>
    %32 = arith.maximumf %29, %31 : vector<8x32xf32>
    %c4 = arith.constant 4 : index
    %c0_21 = arith.constant 0 : index
    %33 = vector.load %arg10[%c4, %c0_21] : memref<9x128xf32, #tpu.memory_space<vmem>>, vector<1x16xf32>
    %c0_22 = arith.constant 0 : index
    %c0_23 = arith.constant 0 : index
    %34 = vector.load %arg5[%c0_22, %c0_23] : memref<32x16xf32, #tpu.memory_space<vmem>>, vector<32x16xf32>
    %cst_24 = arith.constant dense<0.000000e+00> : vector<8x16xf32>
    %35 = tpu.matmul %32, %34, %cst_24 {dimension_numbers = #tpu.dot_dimension_numbers<[1], [0], [0], [1], [0, 0, 1, 1], [], []>} : vector<8x32xf32>, vector<32x16xf32>, vector<8x16xf32> -> vector<8x16xf32>
    %36 = vector.broadcast %33 : vector<1x16xf32> to vector<8x16xf32>
    %37 = arith.addf %35, %36 : vector<8x16xf32>
    %cst_25 = arith.constant 0.00999999977 : f32
    %38 = vector.broadcast %cst_25 : f32 to vector<8x16xf32>
    %39 = arith.mulf %38, %37 : vector<8x16xf32>
    %40 = arith.maximumf %37, %39 : vector<8x16xf32>
    %c5 = arith.constant 5 : index
    %c0_26 = arith.constant 0 : index
    %41 = vector.load %arg10[%c5, %c0_26] : memref<9x128xf32, #tpu.memory_space<vmem>>, vector<1x16xf32>
    %c0_27 = arith.constant 0 : index
    %c0_28 = arith.constant 0 : index
    %42 = vector.load %arg6[%c0_27, %c0_28] : memref<16x16xf32, #tpu.memory_space<vmem>>, vector<16x16xf32>
    %cst_29 = arith.constant dense<0.000000e+00> : vector<8x16xf32>
    %43 = tpu.matmul %40, %42, %cst_29 {dimension_numbers = #tpu.dot_dimension_numbers<[1], [0], [0], [1], [0, 0, 1, 1], [], []>} : vector<8x16xf32>, vector<16x16xf32>, vector<8x16xf32> -> vector<8x16xf32>
    %44 = vector.broadcast %41 : vector<1x16xf32> to vector<8x16xf32>
    %45 = arith.addf %43, %44 : vector<8x16xf32>
    %cst_30 = arith.constant 0.00999999977 : f32
    %46 = vector.broadcast %cst_30 : f32 to vector<8x16xf32>
    %47 = arith.mulf %46, %45 : vector<8x16xf32>
    %48 = arith.maximumf %45, %47 : vector<8x16xf32>
    %c6 = arith.constant 6 : index
    %c0_31 = arith.constant 0 : index
    %49 = vector.load %arg10[%c6, %c0_31] : memref<9x128xf32, #tpu.memory_space<vmem>>, vector<1x8xf32>
    %c0_32 = arith.constant 0 : index
    %c0_33 = arith.constant 0 : index
    %50 = vector.load %arg7[%c0_32, %c0_33] : memref<16x8xf32, #tpu.memory_space<vmem>>, vector<16x8xf32>
    %cst_34 = arith.constant dense<0.000000e+00> : vector<8x8xf32>
    %51 = tpu.matmul %48, %50, %cst_34 {dimension_numbers = #tpu.dot_dimension_numbers<[1], [0], [0], [1], [0, 0, 1, 1], [], []>} : vector<8x16xf32>, vector<16x8xf32>, vector<8x8xf32> -> vector<8x8xf32>
    %52 = vector.broadcast %49 : vector<1x8xf32> to vector<8x8xf32>
    %53 = arith.addf %51, %52 : vector<8x8xf32>
    %cst_35 = arith.constant 0.00999999977 : f32
    %54 = vector.broadcast %cst_35 : f32 to vector<8x8xf32>
    %55 = arith.mulf %54, %53 : vector<8x8xf32>
    %56 = arith.maximumf %53, %55 : vector<8x8xf32>
    %c7 = arith.constant 7 : index
    %c0_36 = arith.constant 0 : index
    %57 = vector.load %arg10[%c7, %c0_36] : memref<9x128xf32, #tpu.memory_space<vmem>>, vector<1x8xf32>
    %c0_37 = arith.constant 0 : index
    %c0_38 = arith.constant 0 : index
    %58 = vector.load %arg8[%c0_37, %c0_38] : memref<8x8xf32, #tpu.memory_space<vmem>>, vector<8x8xf32>
    %cst_39 = arith.constant dense<0.000000e+00> : vector<8x8xf32>
    %59 = tpu.matmul %56, %58, %cst_39 {dimension_numbers = #tpu.dot_dimension_numbers<[1], [0], [0], [1], [0, 0, 1, 1], [], []>} : vector<8x8xf32>, vector<8x8xf32>, vector<8x8xf32> -> vector<8x8xf32>
    %60 = vector.broadcast %57 : vector<1x8xf32> to vector<8x8xf32>
    %61 = arith.addf %59, %60 : vector<8x8xf32>
    %cst_40 = arith.constant 0.00999999977 : f32
    %62 = vector.broadcast %cst_40 : f32 to vector<8x8xf32>
    %63 = arith.mulf %62, %61 : vector<8x8xf32>
    %64 = arith.maximumf %61, %63 : vector<8x8xf32>
    %c0_41 = arith.constant 0 : index
    %c0_42 = arith.constant 0 : index
    %65 = vector.load %arg9[%c0_41, %c0_42] : memref<8x8xf32, #tpu.memory_space<vmem>>, vector<8x8xf32>
    %cst_43 = arith.constant dense<0.000000e+00> : vector<8x8xf32>
    %66 = tpu.matmul %64, %65, %cst_43 {dimension_numbers = #tpu.dot_dimension_numbers<[1], [0], [0], [1], [0, 0, 1, 1], [], []>} : vector<8x8xf32>, vector<8x8xf32>, vector<8x8xf32> -> vector<8x8xf32>
    %c8 = arith.constant 8 : index
    %c0_44 = arith.constant 0 : index
    %67 = vector.load %arg10[%c8, %c0_44] : memref<9x128xf32, #tpu.memory_space<vmem>>, vector<1x8xf32>
    %68 = vector.broadcast %67 : vector<1x8xf32> to vector<8x8xf32>
    %69 = arith.addf %66, %68 : vector<8x8xf32>
    %c0_45 = arith.constant 0 : index
    %c0_46 = arith.constant 0 : index
    %70 = vector.load %arg11[%c0_45, %c0_46] : memref<8x8xf32, #tpu.memory_space<vmem>>, vector<8x8xf32>
    tpu.vector_store %arg11[%c0_45, %c0_46], %69 {strides = array<i32>} : memref<8x8xf32, #tpu.memory_space<vmem>>, vector<8x8xf32>,
    return
  }
}

</mosaic_0001>

<bundles_post_ra>
// kernel: tpu_custom_call.1
= control target key start
LH: loop header
LB: loop body
LE: loop exit
PB: predicated region body
PF: predicated region fallthrough
CT: control target
= control target key end

     0   :  { %v1036_v1 = vmov 0.0   ;;  %vm1037_vm0 = vmmov 0   ;;  %s1343_s0 = inlined_call_operand.vmem [shape: f32[8,128], index: 0, kind: input, shape index: {}]   ;;  %s1344_s1 = inlined_call_operand.vmem [shape: f32[128,64], index: 1, kind: input, shape index: {}]   ;;  %s1345_s2 = inlined_call_operand.vmem [shape: f32[64,64], index: 2, kind: input, shape index: {}]   ;;  %s1346_s3 = inlined_call_operand.vmem [shape: f32[64,32], index: 3, kind: input, shape index: {}]   ;;  %s1347_s4 = inlined_call_operand.vmem [shape: f32[32,32], index: 4, kind: input, shape index: {}]   ;;  %s1348_s5 = inlined_call_operand.vmem [shape: f32[32,16], index: 5, kind: input, shape index: {}]   ;;  %s1349_s6 = inlined_call_operand.vmem [shape: f32[16,16], index: 6, kind: input, shape index: {}]   ;;  %s1350_s7 = inlined_call_operand.vmem [shape: f32[16,8], index: 7, kind: input, shape index: {}]   ;;  %s1351_s8 = inlined_call_operand.vmem [shape: f32[8,8], index: 8, kind: input, shape index: {}]   ;;  %s1352_s9 = inlined_call_operand.vmem [shape: f32[8,8], index: 9, kind: input, shape index: {}]   ;;  %s1353_s10 = inlined_call_operand.vmem [shape: f32[9,128], index: 10, kind: input, shape index: {}]   ;;  %s1354_s11 = inlined_call_operand.hbm [shape: f32[8,8], index: 11, kind: output, shape index: {}]  }
   0x1   :  { %v56_v0 = vld [vmem:[%s1344_s1 + $0x78] sm:$0xff]  ;;  %892 = vmatprep.subr.mxu0 %v1036_v1  ;;  %v55_v2 = vld [vmem:[%s1344_s1 + $0x70] sm:$0xff]  ;;  %924 = vmatprep.mubr.msk.f32.mxu0 %vm1037_vm0, %v1036_v1  ;;  %v54_v3 = vld [vmem:[%s1344_s1 + $0x68] sm:$0xff] }
   0x2   :  { %893 = vmatpush3.msra.mxu0 %v56_v0  ;;  %927 = vmatprep.subr.mxu1 %v1036_v1  ;;  %v53_v4 = vld [vmem:[%s1344_s1 + $0x60] sm:$0xff]  ;;  %v141_v5 = vld [vmem:[%s1345_s2 + $0x38] sm:$0xff]  ;;  %v140_v6 = vld [vmem:[%s1345_s2 + $0x30] sm:$0xff] }
   0x3   :  { %894 = vmatprep.subr.mxu0 %v1036_v1  ;;  %943 = vmatprep.mubr.msk.f32.mxu1 %vm1037_vm0, %v1036_v1  ;;  %v52_v7 = vld [vmem:[%s1344_s1 + $0x58] sm:$0xff]  ;;  %v139_v8 = vld [vmem:[%s1345_s2 + $0x28] sm:$0xff] }
   0x4   :  { %895 = vmatpush3.msra.mxu0 %v55_v2  ;;  %928 = vmatpush3.msra.mxu1 %v141_v5 }
   0x5   :  { %896 = vmatprep.subr.mxu0 %v1036_v1  ;;  %929 = vmatprep.subr.mxu1 %v1036_v1 }
   0x6   :  { %897 = vmatpush3.msra.mxu0 %v54_v3 }
   0x7   :  { %898 = vmatprep.subr.mxu0 %v1036_v1 }
   0x8   :  { %16 = vsyncpa [#allocation3], 0  ;;  %899 = vmatpush3.msra.mxu0 %v53_v4  ;;  %930 = vmatpush3.msra.mxu1 %v140_v6  ;;  %v51_v9 = vld [vmem:[%s1344_s1 + $0x50] sm:$0xff]  ;;  %v138_v10 = vld [vmem:[%s1345_s2 + $0x20] sm:$0xff]  ;;  %vm146_vm1 = vcmask 523264   ;;  %vm319_vm2 = vcmask 261120  }
   0x9   :  { %900 = vmatprep.subr.mxu0 %v1036_v1  ;;  %931 = vmatprep.subr.mxu1 %v1036_v1  ;;  %v50_v11 = vld [vmem:[%s1344_s1 + $0x48] sm:$0xff]  ;;  %v49_v12 = vld [vmem:[%s1344_s1 + $0x40] sm:$0xff]  ;;  %v48_v13 = vld [vmem:[%s1344_s1 + $0x38] sm:$0xff]  ;;  %vm486_vm3 = vcmask 130048   ;;  %vm650_vm4 = vcmask 64512   ;;  %s1038_s17 = smov [#allocation2]  }
   0xa   :  { %901 = vmatpush3.msra.mxu0 %v52_v7  ;;  %932 = vmatpush3.msra.mxu1 %v139_v8  ;;  %v47_v14 = vld [vmem:[%s1344_s1 + $0x30] sm:$0xff]  ;;  %v46_v15 = vld [vmem:[%s1344_s1 + $0x28] sm:$0xff]  ;;  %v45_v16 = vld [vmem:[%s1344_s1 + $0x20] sm:$0xff]  ;;  %s812_s18 = sshll.u32 %s1038_s17, 4  ;;  %s813_s18 = int_to_ptr.vmem [resolvable:$true] %s812_s18 }
   0xb   :  { %902 = vmatprep.subr.mxu0 %v1036_v1  ;;  %933 = vmatprep.subr.mxu1 %v1036_v1  ;;  %v44_v17 = vld [vmem:[%s1344_s1 + $0x18] sm:$0xff]  ;;  %v43_v18 = vld [vmem:[%s1344_s1 + $0x10] sm:$0xff]  ;;  %v42_v19 = vld [vmem:[%s1344_s1 + $0x8] sm:$0xff]  ;;  %p1019_p1 = scmp.lt.s32.totalorder %s813_s18, %s813_s18 }
   0xc   :  { %903 = vmatpush3.msra.mxu0 %v51_v9  ;;  %934 = vmatpush3.msra.mxu1 %v138_v10  ;;  %v41_v20 = vld [vmem:[%s1344_s1] sm:$0xff]  ;;  %v137_v22 = vld [vmem:[%s1345_s2 + $0x18] sm:$0xff]  ;;  %v136_v23 = vld [vmem:[%s1345_s2 + $0x10] sm:$0xff] }
   0xd   :  { %904 = vmatprep.subr.mxu0 %v1036_v1  ;;  %935 = vmatprep.subr.mxu1 %v1036_v1  ;;  %v39_v21 = vld [vmem:[%s1343_s0] sm:$0xff]  ;;  %v135_v24 = vld [vmem:[%s1345_s2 + $0x8] sm:$0xff]  ;;  %v230_v32 = vld [vmem:[%s1346_s3 + $0x38] sm:$0xff] }
   0xe   :  { %905 = vmatpush3.msra.mxu0 %v50_v11  ;;  %936 = vmatpush3.msra.mxu1 %v137_v22  ;;  %v134_v25 = vld [vmem:[%s1345_s2] sm:$0xff]  ;;  %v229_v33 = vld [vmem:[%s1346_s3 + $0x30] sm:$0xff]  ;;  %v228_v34 = vld [vmem:[%s1346_s3 + $0x28] sm:$0xff] }
   0xf   :  { %906 = vmatprep.subr.mxu0 %v1036_v1  ;;  %937 = vmatprep.subr.mxu1 %v1036_v1  ;;  %v820_v26 = vld [vmem:[%s1353_s10] ss:$0 sm:$0xff]  ;;  %v226_v36 = vld [vmem:[%s1346_s3 + $0x18] sm:$0xff]  ;;  %v225_v37 = vld [vmem:[%s1346_s3 + $0x10] sm:$0xff] }
  0x10   :  { %907 = vmatpush3.msra.mxu0 %v49_v12  ;;  %938 = vmatpush3.msra.mxu1 %v136_v23  ;;  %v227_v35 = vld [vmem:[%s1346_s3 + $0x20] sm:$0xff]  ;;  %v224_v38 = vld [vmem:[%s1346_s3 + $0x8] sm:$0xff]  ;;  %v314_v46 = vld [vmem:[%s1347_s4 + $0x18] sm:$0xff] }
  0x11   :  { %908 = vmatprep.subr.mxu0 %v1036_v1  ;;  %939 = vmatprep.subr.mxu1 %v1036_v1  ;;  %v223_v39 = vld [vmem:[%s1346_s3] sm:$0xff]  ;;  %v313_v47 = vld [vmem:[%s1347_s4 + $0x10] sm:$0xff]  ;;  %v312_v48 = vld [vmem:[%s1347_s4 + $0x8] sm:$0xff] }
  0x12   :  { %909 = vmatpush3.msra.mxu0 %v48_v13  ;;  %940 = vmatpush3.msra.mxu1 %v135_v24  ;;  %v821_v40 = vld [vmem:[%s1353_s10 + $0x1] ss:$0 sm:$0xff]  ;;  %v823_v50 = vld [vmem:[%s1353_s10 + $0x2] ss:$0 sm:$0xff]  ;;  %v399_v56 = vld [vmem:[%s1348_s5 + $0x18] sm:$0xff] }
  0x13   :  { %910 = vmatprep.subr.mxu0 %v1036_v1  ;;  %941 = vmatprep.subr.mxu1 %v1036_v1  ;;  %v311_v49 = vld [vmem:[%s1347_s4] sm:$0xff]  ;;  %v398_v57 = vld [vmem:[%s1348_s5 + $0x10] sm:$0xff]  ;;  %v397_v58 = vld [vmem:[%s1348_s5 + $0x8] sm:$0xff] }
  0x14   :  { %911 = vmatpush3.msra.mxu0 %v47_v14  ;;  %942 = vmatpush3.msra.mxu1 %v134_v25  ;;  %v396_v59 = vld [vmem:[%s1348_s5] sm:$0xff]  ;;  %v481_v3 = vld [vmem:[%s1349_s6 + $0x8] sm:$0xff] }
  0x15   :  { %912 = vmatprep.subr.mxu0 %v1036_v1  ;;  %946 = vmatprep.subr.mxu1 %v1036_v1  ;;  %v825_v60 = vld [vmem:[%s1353_s10 + $0x3] ss:$0 sm:$0xff]  ;;  %v827_v5 = vld [vmem:[%s1353_s10 + $0x4] ss:$0 sm:$0xff]  ;;  %v564_v11 = vld [vmem:[%s1350_s7 + $0x8] sm:$0xff] }
  0x16   :  { %913 = vmatpush3.msra.mxu0 %v46_v15  ;;  %v480_v4 = vld [vmem:[%s1349_s6] sm:$0xff] }
  0x17   :  { %914 = vmatprep.subr.mxu0 %v1036_v1  ;;  %v563_v12 = vld [vmem:[%s1350_s7] sm:$0xff] }
  0x18   :  { %915 = vmatpush3.msra.mxu0 %v45_v16  ;;  %v829_v13 = vld [vmem:[%s1353_s10 + $0x5] ss:$0 sm:$0xff] }
  0x19   :  { %916 = vmatprep.subr.mxu0 %v1036_v1 }
  0x1a   :  { %917 = vmatpush3.msra.mxu0 %v44_v17 }
  0x1b   :  { %918 = vmatprep.subr.mxu0 %v1036_v1 }
  0x1c   :  { %919 = vmatpush3.msra.mxu0 %v43_v18 }
  0x1d   :  { %920 = vmatprep.subr.mxu0 %v1036_v1 }
  0x1e   :  { %921 = vmatpush3.msra.mxu0 %v42_v19  ;;  %v645_v19 = vld [vmem:[%s1351_s8] sm:$0xff] }
  0x1f   :  { %922 = vmatprep.subr.mxu0 %v1036_v1 }
  0x20   :  { %923 = vmatpush3.msra.mxu0 %v41_v20  ;;  %v831_v20 = vld [vmem:[%s1353_s10 + $0x6] ss:$0 sm:$0xff] }
  0x21   :  { %925 = vmatmul.mubr.f32.vlgmr.msra.gmra.mxu0 %v39_v21  ;;  %965 = vmatprep.subr.mxu0 %v1036_v1 }
  0x22   :  { %973 = vmatprep.mubr.msk.f32.mxu0 %vm1037_vm0, %v1036_v1  ;;  %966 = vmatpush3.msra.mxu0 %v314_v46 }
  0x23   :  { %967 = vmatprep.subr.mxu0 %v1036_v1 }
  0x24   :  { %968 = vmatpush3.msra.mxu0 %v313_v47 }
  0x25   :  { %969 = vmatprep.subr.mxu0 %v1036_v1 }
  0x26   :  { %970 = vmatpush3.msra.mxu0 %v312_v48 }
  0x27   :  { %971 = vmatprep.subr.mxu0 %v1036_v1 }
  0x28   :  { %972 = vmatpush3.msra.mxu0 %v311_v49 }
  0x29   :  { %987 = vmatprep.subr.mxu0 %v1036_v1 }
  0xe1   :  { %v127_v27 = vpop.f32.mrf.mxu0 }
  0xe2   :  { %v128_v28 = vadd.f32 %v820_v26, %v127_v27  ;;  %v833_v26 = vld [vmem:[%s1353_s10 + $0x7] ss:$0 sm:$0xff] }
  0xe3   :  { %v926_v29 = vpop.f32.mrf.mxu0 }
  0xe4   :  { %v131_v30 = vmul.f32 0.01, %v128_v28 }
  0xe6   :  { %v132_v31 = vmax.f32 %v128_v28, %v131_v30 }
  0xe8   :  { %944 = vmatmul.mubr.msk.f32.vlgmr.msra.gmra.mxu1 %vm146_vm1, %v132_v31 }
  0xe9   :  { %947 = vmatpush3.msra.mxu1 %v230_v32  ;;  %962 = vmatprep.mubr.msk.f32.mxu1 %vm1037_vm0, %v1036_v1  ;;  %v835_v32 = vld [vmem:[%s1353_s10 + $0x8] ss:$0 sm:$0xff] }
  0xea   :  { %948 = vmatprep.subr.mxu1 %v1036_v1 }
  0xeb   :  { %949 = vmatpush3.msra.mxu1 %v229_v33 }
  0xec   :  { %950 = vmatprep.subr.mxu1 %v1036_v1 }
  0xed   :  { %951 = vmatpush3.msra.mxu1 %v228_v34 }
  0xee   :  { %952 = vmatprep.subr.mxu1 %v1036_v1 }
  0xef   :  { %953 = vmatpush3.msra.mxu1 %v227_v35 }
  0xf0   :  { %954 = vmatprep.subr.mxu1 %v1036_v1 }
  0xf1   :  { %955 = vmatpush3.msra.mxu1 %v226_v36 }
  0xf2   :  { %956 = vmatprep.subr.mxu1 %v1036_v1 }
  0xf3   :  { %957 = vmatpush3.msra.mxu1 %v225_v37 }
  0xf4   :  { %958 = vmatprep.subr.mxu1 %v1036_v1 }
  0xf5   :  { %959 = vmatpush3.msra.mxu1 %v224_v38 }
  0xf6   :  { %960 = vmatprep.subr.mxu1 %v1036_v1 }
  0xf7   :  { %961 = vmatpush3.msra.mxu1 %v223_v39 }
  0xf8   :  { %976 = vmatprep.subr.mxu1 %v1036_v1 }
 0x1a8   :  { %v216_v41 = vpop.f32.mrf.mxu1 }
 0x1a9   :  { %v217_v42 = vadd.f32 %v821_v40, %v216_v41 }
 0x1aa   :  { %v945_v43 = vpop.f32.mrf.mxu1 }
 0x1ab   :  { %v220_v44 = vmul.f32 0.01, %v217_v42 }
 0x1ad   :  { %v221_v45 = vmax.f32 %v217_v42, %v220_v44 }
 0x1af   :  { %963 = vmatmul.mubr.msk.f32.vlgmr.msra.gmra.mxu1 %vm146_vm1, %v221_v45 }
 0x1b0   :  { %984 = vmatprep.mubr.msk.f32.mxu1 %vm1037_vm0, %v1036_v1  ;;  %977 = vmatpush3.msra.mxu1 %v399_v56 }
 0x1b1   :  { %978 = vmatprep.subr.mxu1 %v1036_v1 }
 0x1b2   :  { %979 = vmatpush3.msra.mxu1 %v398_v57 }
 0x1b3   :  { %980 = vmatprep.subr.mxu1 %v1036_v1 }
 0x1b4   :  { %981 = vmatpush3.msra.mxu1 %v397_v58 }
 0x1b5   :  { %982 = vmatprep.subr.mxu1 %v1036_v1 }
 0x1b6   :  { %983 = vmatpush3.msra.mxu1 %v396_v59 }
 0x1b7   :  { %994 = vmatprep.subr.mxu1 %v1036_v1 }
 0x26f   :  { %v304_v51 = vpop.f32.mrf.mxu1 }
 0x270   :  { %v305_v52 = vadd.f32 %v823_v50, %v304_v51 }
 0x271   :  { %v964_v53 = vpop.f32.mrf.mxu1 }
 0x272   :  { %v308_v54 = vmul.f32 0.01, %v305_v52 }
 0x274   :  { %v309_v55 = vmax.f32 %v305_v52, %v308_v54 }
 0x276   :  { %974 = vmatmul.mubr.msk.f32.vlgmr.msra.gmra.mxu0 %vm319_vm2, %v309_v55 }
 0x277   :  { %991 = vmatprep.mubr.msk.f32.mxu0 %vm1037_vm0, %v1036_v1  ;;  %988 = vmatpush3.msra.mxu0 %v481_v3 }
 0x278   :  { %989 = vmatprep.subr.mxu0 %v1036_v1 }
 0x279   :  { %990 = vmatpush3.msra.mxu0 %v480_v4 }
 0x27a   :  { %1001 = vmatprep.subr.mxu0 %v1036_v1 }
 0x336   :  { %v389_v61 = vpop.f32.mrf.mxu0 }
 0x337   :  { %v390_v62 = vadd.f32 %v825_v60, %v389_v61 }
 0x338   :  { %v975_v63 = vpop.f32.mrf.mxu0 }
 0x339   :  { %v393_v0 = vmul.f32 0.01, %v390_v62 }
 0x33b   :  { %v394_v2 = vmax.f32 %v390_v62, %v393_v0 }
 0x33d   :  { %985 = vmatmul.mubr.msk.f32.vlgmr.msra.gmra.mxu1 %vm319_vm2, %v394_v2 }
 0x33e   :  { %998 = vmatprep.mubr.msk.f32.mxu1 %vm1037_vm0, %v1036_v1  ;;  %995 = vmatpush3.msra.mxu1 %v564_v11 }
 0x33f   :  { %996 = vmatprep.subr.mxu1 %v1036_v1 }
 0x340   :  { %997 = vmatpush3.msra.mxu1 %v563_v12 }
 0x341   :  { %1006 = vmatprep.subr.mxu1 %v1036_v1 }
 0x3fd   :  { %v473_v6 = vpop.f32.mrf.mxu1 }
 0x3fe   :  { %v474_v7 = vadd.f32 %v827_v5, %v473_v6 }
 0x3ff   :  { %v986_v8 = vpop.f32.mrf.mxu1 }
 0x400   :  { %v477_v9 = vmul.f32 0.01, %v474_v7 }
 0x402   :  { %v478_v10 = vmax.f32 %v474_v7, %v477_v9 }
 0x404   :  { %992 = vmatmul.mubr.msk.f32.vlgmr.msra.gmra.mxu0 %vm486_vm3, %v478_v10 }
 0x405   :  { %1003 = vmatprep.mubr.msk.f32.mxu0 %vm1037_vm0, %v1036_v1  ;;  %1002 = vmatpush3.msra.mxu0 %v645_v19 }
 0x4c4   :  { %v556_v14 = vpop.f32.mrf.mxu0 }
 0x4c5   :  { %v557_v15 = vadd.f32 %v829_v13, %v556_v14 }
 0x4c6   :  { %v993_v16 = vpop.f32.mrf.mxu0 }
 0x4c7   :  { %v560_v17 = vmul.f32 0.01, %v557_v15 }
 0x4c9   :  { %v561_v18 = vmax.f32 %v557_v15, %v560_v17 }
 0x4cb   :  { %999 = vmatmul.mubr.msk.f32.vlgmr.msra.gmra.mxu1 %vm486_vm3, %v561_v18 }
 0x4cc   :  { %1008 = vmatprep.mubr.msk.f32.mxu1 %vm1037_vm0, %v1036_v1  ;;  %v726_v1 = vld [vmem:[%s1352_s9] sm:$0xff]  ;;  %s1014_s9 = scalar_lea.vmem %s813_s18, 128 }
 0x4cd   :  { %1007 = vmatpush3.msra.mxu1 %v726_v1  ;;  %p1015_p0 = scmp.ne.s32.totalorder %s813_s18, %s1014_s9  ;;  %p1020_p2 = scmp.lt.s32.totalorder %s1014_s9, %s1014_s9 }
 0x4cf   :  { %p1021_p3 = por %p1020_p2, %p1019_p1 }
 0x4d1   :  { %p1022_p4 = pnand %p1021_p3, %p1015_p0 }
 0x58b   :  { %v638_v21 = vpop.f32.mrf.mxu1 }
 0x58c   :  { %v639_v22 = vadd.f32 %v831_v20, %v638_v21 }
 0x58d   :  { %v1000_v23 = vpop.f32.mrf.mxu1 }
 0x58e   :  { %v642_v24 = vmul.f32 0.01, %v639_v22 }
 0x590   :  { %v643_v25 = vmax.f32 %v639_v22, %v642_v24 }
 0x592   :  { %1004 = vmatmul.mubr.msk.f32.vlgmr.msra.gmra.mxu0 %vm650_vm4, %v643_v25 }
 0x652   :  { %v720_v27 = vpop.f32.mrf.mxu0 }
 0x653   :  { %v721_v28 = vadd.f32 %v833_v26, %v720_v27 }
 0x654   :  { %v1005_v29 = vpop.f32.mrf.mxu0 }
 0x655   :  { %v724_v30 = vmul.f32 0.01, %v721_v28 }
 0x657   :  { %v725_v31 = vmax.f32 %v721_v28, %v724_v30 }
 0x659   :  { %1009 = vmatmul.mubr.msk.f32.vlgmr.msra.gmra.mxu1 %vm650_vm4, %v725_v31 }
 0x719   :  { %v801_v33 = vpop.f32.mrf.mxu1 }
 0x71a   :  { %v802_v34 = vadd.f32 %v835_v32, %v801_v33 }
 0x71b   :  { %v1010_v35 = vpop.f32.mrf.mxu1 }
 0x71c   :  { %805 = vst.msk [vmem:[#allocation2] sm:$0xff] %vm650_vm4, %v802_v34 }
 0x71d   :  { %1025 = shalt.err (!%p1022_p4)
}
 0x71e   :  { %815 = dma.vmem_to_hbm [thread:$0]  %s813_s18, 128, %s1354_s11, [#allocation3]  }
 0x71f   :  { %1034 = dma.done.wait [#allocation3], 128  }
 0x720   :  { %1035 = vsyncadd [#allocation3], 4294967168 }
 0x721   :  { %819 = vsyncpa [#allocation3], 1 }

</bundles_post_ra>
